<compile_context>
chip_gen: v5e
topology: v5e:2x2
jax: 0.10.0
libtpu: 0.0.40
codegen_flags: <defaults>
</compile_context>

<pallas_src>
import functools

import jax
import jax.numpy as jnp
from jax.experimental import pallas as pl
from jax.experimental.pallas import tpu as pltpu


def _round_up(x, m):
    return ((x + m - 1) // m) * m


def cnn_kernel(x_ref, w_ref, b_ref, o_ref, *, l_out, l_out_pad, k):
    """One batch tile: conv (k accumulated matmuls) + bias + ReLU + max-pool.

    x_ref: (n_blk, mword_pad, echar)   time on sublanes, channels on lanes
    w_ref: (k, echar, eword_pad)       per-tap weight tiles, lane-dense columns
    b_ref: (1, eword_pad)              lane-dense bias
    o_ref: (n_blk, eword_pad)          lane-dense pooled output
    """
    n_blk = x_ref.shape[0]
    echar = x_ref.shape[2]
    eword_pad = o_ref.shape[1]

    xv = x_ref[...]          # (n_blk, mword_pad, echar)
    wv = w_ref[...]          # (k, echar, eword_pad)

    # In-register im2col: k static shifted windows -> k accumulated MXU pushes.
    acc = jnp.zeros((n_blk * l_out_pad, eword_pad), jnp.float32)
    for j in range(k):       # k is small & static -> fully unrolled
        xj = xv[:, j:j + l_out_pad, :].reshape(n_blk * l_out_pad, echar)
        acc = acc + jnp.dot(xj, wv[j], preferred_element_type=jnp.float32)

    acc = jnp.maximum(acc + b_ref[...], 0.0)          # bias + ReLU

    # (8,128)-aligned max-pool over time. Pad rows (t >= l_out) hold
    # relu(garbage + bias) >= 0; mask them to 0 which never exceeds the true
    # per-sample max (ReLU output is >= 0 and l_out >= 1).
    acc3 = acc.reshape(n_blk, l_out_pad, eword_pad)
    if l_out_pad != l_out:
        t_idx = jax.lax.broadcasted_iota(jnp.int32, acc3.shape, 1)
        acc3 = jnp.where(t_idx < l_out, acc3, 0.0)
    o_ref[...] = jnp.max(acc3, axis=1).astype(o_ref.dtype)


def cnn_forward(x, w, b, k):
    """x: (N, echar, mword), w: (eword, echar, k), b: (eword,) -> (N, eword, 1)."""
    n, echar, mword = x.shape
    eword = w.shape[0]
    l_out = mword - k + 1
    assert l_out >= 1, "kernel size k must be <= mword"

    l_out_pad = _round_up(l_out, 8)                   # sublane-aligned pooling
    mword_pad = _round_up(l_out_pad + k - 1, 8)       # room for all k shifts
    eword_pad = _round_up(eword, 128)                 # lane-dense output/weights

    # Batch tiling: aim for a few hundred matmul rows per grid step; when the
    # batch is split across steps, keep the block a multiple of 8 samples.
    rows_target = 512
    n_blk = max(1, rows_target // l_out_pad)
    if n_blk >= n:
        n_blk, n_pad = n, n
    else:
        n_blk = _round_up(n_blk, 8)
        n_pad = _round_up(n, n_blk)
    grid = (n_pad // n_blk,)

    # Layout plumbing (cheap, single-pass XLA ops — no k-fold im2col in HBM).
    x_t = jnp.transpose(x, (0, 2, 1))                                  # (N, mword, echar)
    x_p = jnp.pad(x_t, ((0, n_pad - n), (0, mword_pad - mword), (0, 0)))
    w_p = jnp.pad(jnp.transpose(w, (2, 1, 0)),                         # (k, echar, eword)
                  ((0, 0), (0, 0), (0, eword_pad - eword))).astype(x.dtype)
    b_p = jnp.pad(b, (0, eword_pad - eword)).reshape(1, eword_pad).astype(x.dtype)

    itemsize = jnp.dtype(x.dtype).itemsize
    cost = pl.CostEstimate(
        flops=2 * n * l_out * echar * k * eword,
        transcendentals=0,
        bytes_accessed=(x_p.size + w_p.size + b_p.size + n_pad * eword_pad) * itemsize,
    )

    kern = functools.partial(cnn_kernel, l_out=l_out, l_out_pad=l_out_pad, k=k)
    out = pl.pallas_call(
        kern,
        out_shape=jax.ShapeDtypeStruct((n_pad, eword_pad), x.dtype),
        grid=grid,
        in_specs=[
            pl.BlockSpec((n_blk, mword_pad, echar), lambda i: (i, 0, 0)),
            pl.BlockSpec((k, echar, eword_pad), lambda i: (0, 0, 0)),   # resident
            pl.BlockSpec((1, eword_pad), lambda i: (0, 0)),             # resident
        ],
        out_specs=pl.BlockSpec((n_blk, eword_pad), lambda i: (i, 0)),
        compiler_params=pltpu.CompilerParams(
            dimension_semantics=("parallel",),   # batch tiles are independent
        ),
        cost_estimate=cost,
    )(x_p, w_p, b_p)

    return out[:n, :eword].reshape(n, eword, 1)


def cnn_reference(x, w, b, k):
    """Pure-JAX reference matching nn.Conv1d -> relu -> MaxPool1d(mword-k+1)."""
    l_out = x.shape[-1] - k + 1
    windows = jnp.stack([x[:, :, j:j + l_out] for j in range(k)], axis=-1)  # (N, echar, l_out, k)
    conv = jnp.einsum("nclk,eck->nel", windows, w) + b[None, :, None]
    return jnp.max(jax.nn.relu(conv), axis=-1, keepdims=True)


if __name__ == "__main__":
    # echar char-embed dim, mword max word length, eword word-embed dim, k conv size.
    N, ECHAR, MWORD, EWORD, K = 6, 4, 16, 32, 5

    key = jax.random.PRNGKey(0)
    kx, kw, kb = jax.random.split(key, 3)
    x = jax.random.normal(kx, (N, ECHAR, MWORD), dtype=jnp.float32)
    # Deterministic synthetic Conv1d parameters (not a checkpoint load).
    w = jax.random.normal(kw, (EWORD, ECHAR, K), dtype=jnp.float32) * 0.1
    b = jax.random.normal(kb, (EWORD,), dtype=jnp.float32) * 0.1

    out = jax.block_until_ready(cnn_forward(x, w, b, K))
    ref = cnn_reference(x, w, b, K)

    assert out.shape == (N, EWORD, 1), out.shape
    assert jnp.allclose(out, ref, atol=1e-5, rtol=1e-5), "mismatch vs reference"

    print("KERNEL_OK")
</pallas_src>

<mosaic_0001>
module attributes {stable_mosaic.version = 11 : i64} {
  func.func @cnn_kernel(%arg0: i32, %arg1: memref<6x24x4xf32, #tpu.memory_space<vmem>>, %arg2: memref<5x4x128xf32, #tpu.memory_space<vmem>>, %arg3: memref<1x128xf32, #tpu.memory_space<vmem>>, %arg4: memref<6x128xf32, #tpu.memory_space<vmem>>) attributes {dimension_semantics = [#tpu.dimension_semantics<parallel>], iteration_bounds = array<i64: 1>, scalar_prefetch = 0 : i64, scratch_operands = 0 : i64, tpu.core_type = #tpu.core_type<tc>, window_params = [{transform_indices = @transform_0, window_bounds = array<i64: 6, 24, 4>}, {pipeline_mode = #tpu.pipeline_mode<synchronous>, transform_indices = @transform_1, window_bounds = array<i64: 5, 4, 128>}, {pipeline_mode = #tpu.pipeline_mode<synchronous>, transform_indices = @transform_2, window_bounds = array<i64: 1, 128>}, {transform_indices = @transform_3, window_bounds = array<i64: 6, 128>}]} {
    %c0 = arith.constant 0 : index
    %c0_0 = arith.constant 0 : index
    %c0_1 = arith.constant 0 : index
    %0 = vector.load %arg1[%c0, %c0_0, %c0_1] : memref<6x24x4xf32, #tpu.memory_space<vmem>>, vector<6x24x4xf32>
    %c0_2 = arith.constant 0 : index
    %c0_3 = arith.constant 0 : index
    %c0_4 = arith.constant 0 : index
    %1 = vector.load %arg2[%c0_2, %c0_3, %c0_4] : memref<5x4x128xf32, #tpu.memory_space<vmem>>, vector<5x4x128xf32>
    %cst = arith.constant 0.000000e+00 : f32
    %2 = vector.broadcast %cst : f32 to vector<96x128xf32>
    %3 = vector.extract_strided_slice %0 {offsets = [0, 0, 0], sizes = [6, 16, 4], strides = [1, 1, 1]} : vector<6x24x4xf32> to vector<6x16x4xf32>
    %4 = vector.shape_cast %3 : vector<6x16x4xf32> to vector<96x4xf32>
    %5 = vector.extract_strided_slice %1 {offsets = [0, 0, 0], sizes = [1, 4, 128], strides = [1, 1, 1]} : vector<5x4x128xf32> to vector<1x4x128xf32>
    %6 = vector.shape_cast %5 : vector<1x4x128xf32> to vector<4x128xf32>
    %cst_5 = arith.constant dense<0.000000e+00> : vector<96x128xf32>
    %7 = tpu.matmul %4, %6, %cst_5 {dimension_numbers = #tpu.dot_dimension_numbers<[1], [0], [0], [1], [0, 0, 1, 1], [], []>} : vector<96x4xf32>, vector<4x128xf32>, vector<96x128xf32> -> vector<96x128xf32>
    %8 = arith.addf %2, %7 : vector<96x128xf32>
    %9 = vector.extract_strided_slice %0 {offsets = [0, 1, 0], sizes = [6, 16, 4], strides = [1, 1, 1]} : vector<6x24x4xf32> to vector<6x16x4xf32>
    %10 = vector.shape_cast %9 : vector<6x16x4xf32> to vector<96x4xf32>
    %11 = vector.extract_strided_slice %1 {offsets = [1, 0, 0], sizes = [1, 4, 128], strides = [1, 1, 1]} : vector<5x4x128xf32> to vector<1x4x128xf32>
    %12 = vector.shape_cast %11 : vector<1x4x128xf32> to vector<4x128xf32>
    %cst_6 = arith.constant dense<0.000000e+00> : vector<96x128xf32>
    %13 = tpu.matmul %10, %12, %cst_6 {dimension_numbers = #tpu.dot_dimension_numbers<[1], [0], [0], [1], [0, 0, 1, 1], [], []>} : vector<96x4xf32>, vector<4x128xf32>, vector<96x128xf32> -> vector<96x128xf32>
    %14 = arith.addf %8, %13 : vector<96x128xf32>
    %15 = vector.extract_strided_slice %0 {offsets = [0, 2, 0], sizes = [6, 16, 4], strides = [1, 1, 1]} : vector<6x24x4xf32> to vector<6x16x4xf32>
    %16 = vector.shape_cast %15 : vector<6x16x4xf32> to vector<96x4xf32>
    %17 = vector.extract_strided_slice %1 {offsets = [2, 0, 0], sizes = [1, 4, 128], strides = [1, 1, 1]} : vector<5x4x128xf32> to vector<1x4x128xf32>
    %18 = vector.shape_cast %17 : vector<1x4x128xf32> to vector<4x128xf32>
    %cst_7 = arith.constant dense<0.000000e+00> : vector<96x128xf32>
    %19 = tpu.matmul %16, %18, %cst_7 {dimension_numbers = #tpu.dot_dimension_numbers<[1], [0], [0], [1], [0, 0, 1, 1], [], []>} : vector<96x4xf32>, vector<4x128xf32>, vector<96x128xf32> -> vector<96x128xf32>
    %20 = arith.addf %14, %19 : vector<96x128xf32>
    %21 = vector.extract_strided_slice %0 {offsets = [0, 3, 0], sizes = [6, 16, 4], strides = [1, 1, 1]} : vector<6x24x4xf32> to vector<6x16x4xf32>
    %22 = vector.shape_cast %21 : vector<6x16x4xf32> to vector<96x4xf32>
    %23 = vector.extract_strided_slice %1 {offsets = [3, 0, 0], sizes = [1, 4, 128], strides = [1, 1, 1]} : vector<5x4x128xf32> to vector<1x4x128xf32>
    %24 = vector.shape_cast %23 : vector<1x4x128xf32> to vector<4x128xf32>
    %cst_8 = arith.constant dense<0.000000e+00> : vector<96x128xf32>
    %25 = tpu.matmul %22, %24, %cst_8 {dimension_numbers = #tpu.dot_dimension_numbers<[1], [0], [0], [1], [0, 0, 1, 1], [], []>} : vector<96x4xf32>, vector<4x128xf32>, vector<96x128xf32> -> vector<96x128xf32>
    %26 = arith.addf %20, %25 : vector<96x128xf32>
    %27 = vector.extract_strided_slice %0 {offsets = [0, 4, 0], sizes = [6, 16, 4], strides = [1, 1, 1]} : vector<6x24x4xf32> to vector<6x16x4xf32>
    %28 = vector.shape_cast %27 : vector<6x16x4xf32> to vector<96x4xf32>
    %29 = vector.extract_strided_slice %1 {offsets = [4, 0, 0], sizes = [1, 4, 128], strides = [1, 1, 1]} : vector<5x4x128xf32> to vector<1x4x128xf32>
    %30 = vector.shape_cast %29 : vector<1x4x128xf32> to vector<4x128xf32>
    %cst_9 = arith.constant dense<0.000000e+00> : vector<96x128xf32>
    %31 = tpu.matmul %28, %30, %cst_9 {dimension_numbers = #tpu.dot_dimension_numbers<[1], [0], [0], [1], [0, 0, 1, 1], [], []>} : vector<96x4xf32>, vector<4x128xf32>, vector<96x128xf32> -> vector<96x128xf32>
    %32 = arith.addf %26, %31 : vector<96x128xf32>
    %c0_10 = arith.constant 0 : index
    %c0_11 = arith.constant 0 : index
    %33 = vector.load %arg3[%c0_10, %c0_11] : memref<1x128xf32, #tpu.memory_space<vmem>>, vector<1x128xf32>
    %34 = vector.broadcast %33 : vector<1x128xf32> to vector<96x128xf32>
    %35 = arith.addf %32, %34 : vector<96x128xf32>
    %cst_12 = arith.constant 0.000000e+00 : f32
    %36 = vector.broadcast %cst_12 : f32 to vector<96x128xf32>
    %37 = arith.maximumf %35, %36 : vector<96x128xf32>
    %38 = vector.shape_cast %37 : vector<96x128xf32> to vector<6x16x128xf32>
    %39 = tpu.iota {dimensions = array<i32: 1>} : vector<6x16x128xi32>
    %c12_i32 = arith.constant 12 : i32
    %40 = vector.broadcast %c12_i32 : i32 to vector<6x16x128xi32>
    %41 = arith.cmpi slt, %39, %40 : vector<6x16x128xi32>
    %cst_13 = arith.constant 0.000000e+00 : f32
    %42 = vector.broadcast %cst_13 : f32 to vector<6x16x128xf32>
    %43 = arith.select %41, %38, %42 : vector<6x16x128xi1>, vector<6x16x128xf32>
    %cst_14 = arith.constant dense<0xFF800000> : vector<6x128xf32>
    %44 = vector.multi_reduction <maximumf>, %43, %cst_14 [1] : vector<6x16x128xf32> to vector<6x128xf32>
    %c0_15 = arith.constant 0 : index
    %c0_16 = arith.constant 0 : index
    %45 = vector.load %arg4[%c0_15, %c0_16] : memref<6x128xf32, #tpu.memory_space<vmem>>, vector<6x128xf32>
    tpu.vector_store %arg4[%c0_15, %c0_16], %44 {strides = array<i32>} : memref<6x128xf32, #tpu.memory_space<vmem>>, vector<6x128xf32>,
    return
  }
  func.func @transform_0(%arg0: i32) -> (i32, i32, i32) {
    %c0_i32 = arith.constant 0 : i32
    %c0_i32_0 = arith.constant 0 : i32
    %c0_i32_1 = arith.constant 0 : i32
    return %arg0, %c0_i32, %c0_i32_0 : i32, i32, i32
  }
  func.func @transform_1(%arg0: i32) -> (i32, i32, i32) {
    %c0_i32 = arith.constant 0 : i32
    %c0_i32_0 = arith.constant 0 : i32
    %c0_i32_1 = arith.constant 0 : i32
    %c0_i32_2 = arith.constant 0 : i32
    return %c0_i32, %c0_i32_0, %c0_i32_1 : i32, i32, i32
  }
  func.func @transform_2(%arg0: i32) -> (i32, i32) {
    %c0_i32 = arith.constant 0 : i32
    %c0_i32_0 = arith.constant 0 : i32
    %c0_i32_1 = arith.constant 0 : i32
    return %c0_i32, %c0_i32_0 : i32, i32
  }
  func.func @transform_3(%arg0: i32) -> (i32, i32) {
    %c0_i32 = arith.constant 0 : i32
    %c0_i32_0 = arith.constant 0 : i32
    return %arg0, %c0_i32 : i32, i32
  }
}

</mosaic_0001>

<bundles_post_ra>
// kernel: tpu_custom_call.1
= control target key start
LH: loop header
LB: loop body
LE: loop exit
PB: predicated region body
PF: predicated region fallthrough
CT: control target
= control target key end

     0   :  { %vm112_vm0 = vcmask 1043456   ;;  %vm56_vm1 = vcmask 1046528   ;;  %vm87_vm2 = vcmask 31744   ;;  %s1200_s0 = inlined_call_operand.vmem [shape: f32[6,24,4], index: 0, kind: input, shape index: {}]   ;;  %s1201_s1 = inlined_call_operand.vmem [shape: f32[5,4,128], index: 1, kind: input, shape index: {}]   ;;  %s1202_s2 = inlined_call_operand.vmem [shape: f32[1,128], index: 2, kind: input, shape index: {}]   ;;  %s1203_s3 = inlined_call_operand.hbm [shape: f32[6,128], index: 3, kind: output, shape index: {}]  }
   0x1   :  { %v34_v0 = vld [vmem:[%s1201_s1 + $0x4] sm:$0xf]  ;;  %v866_v2 = vld [vmem:[%s1200_s0 + $0x28] sm:$0xff]  ;;  %v880_v6 = vld [vmem:[%s1200_s0 + $0x50] sm:$0xff] }
   0x2   :  { %v861_v1 = vld [vmem:[%s1200_s0 + $0x20] sm:$0xff]  ;;  %803 = vmatpush.msk.msra.mxu1 %vm112_vm0, %v34_v0  ;;  %804 = vmatpush.msk.msra.mxu2 %vm112_vm0, %v34_v0  ;;  %v65_v4 = vrot.slane %v866_v2, 1  ;;  %v875_v5 = vld [vmem:[%s1200_s0 + $0x48] sm:$0xff]  ;;  %v73_v9 = vrot.slane %v880_v6, 1  ;;  %v896_v11 = vld [vmem:[%s1200_s0 + $0x70] sm:$0xff] }
   0x3   :  { %v63_v3 = vrot.slane %v861_v1, 1  ;;  %v885_v7 = vld [vmem:[%s1200_s0 + $0x68] sm:$0xff]  ;;  %v72_v8 = vrot.slane %v875_v5, 1  ;;  %805 = vmatpush.msk.msra.mxu3 %vm112_vm0, %v34_v0  ;;  %738 = vmatpush.msk.msra.mxu0 %vm112_vm0, %v34_v0  ;;  %v80_v14 = vrot.slane %v896_v11, 1  ;;  %v33_v16 = vld [vmem:[%s1201_s1] sm:$0xf] }
   0x4   :  { %v35_v10 = vld [vmem:[%s1201_s1 + $0x8] sm:$0xf]  ;;  %v78_v12 = vrot.slane %v885_v7, 1  ;;  %v36_v15 = vld [vmem:[%s1201_s1 + $0xc] sm:$0xf]  ;;  %v914_v17 = vld [vmem:[%s1200_s0 + $0x30] sm:$0xff]  ;;  %751 = vmatpush.msk.msrb.mxu1 %vm112_vm0, %v33_v16 }
   0x5   :  { %v66_v13 = vsel %vm56_vm1, %v63_v3, %v65_v4  ;;  %764 = vmatpush.msk.msrb.mxu2 %vm112_vm0, %v35_v10  ;;  %v74_v18 = vsel %vm56_vm1, %v72_v8, %v73_v9  ;;  %777 = vmatpush.msk.msrb.mxu3 %vm112_vm0, %v36_v15  ;;  %v922_v19 = vld [vmem:[%s1200_s0 + $0x38] sm:$0xff]  ;;  %v15_v21 = vld [vmem:[%s1200_s0] sm:$0xff]  ;;  %v67_v23 = vrot.slane %v914_v17, 1  ;;  %v940_v25 = vld [vmem:[%s1200_s0 + $0x8] sm:$0xff] }
   0x6   :  { %742 = vmatmul.msk.f32.vlgmr.msra.gmra.mxu1 %vm87_vm2, %v66_v13  ;;  %v927_v20 = vld [vmem:[%s1200_s0 + $0x58] sm:$0xff]  ;;  %745 = vmatmul.msk.f32.vlgmr.msra.gmra.mxu2 %vm87_vm2, %v74_v18  ;;  %v81_v22 = vsel %vm56_vm1, %v78_v12, %v80_v14  ;;  %v68_v24 = vrot.slane %v922_v19, 1  ;;  %v57_v26 = vrot.slane %v15_v21, 1  ;;  %v950_v28 = vld [vmem:[%s1200_s0 + $0x80] sm:$0xff]  ;;  %v58_v30 = vrot.slane %v940_v25, 1  ;;  %v17_v34 = vld [vmem:[%s1200_s0 + $0x10] sm:$0xff] }
   0x7   :  { %v945_v27 = vld [vmem:[%s1200_s0 + $0x78] sm:$0xff]  ;;  %748 = vmatmul.msk.f32.vlgmr.msra.gmra.mxu3 %vm87_vm2, %v81_v22  ;;  %v75_v29 = vrot.slane %v927_v20, 1  ;;  %v37_v31 = vld [vmem:[%s1201_s1 + $0x10] sm:$0xf]  ;;  %v83_v33 = vrot.slane %v950_v28, 1 }
   0x8   :  { %v82_v32 = vrot.slane %v945_v27, 1  ;;  %790 = vmatpush.msk.msrb.mxu0 %vm112_vm0, %v37_v31  ;;  %v59_v35 = vsel %vm56_vm1, %v57_v26, %v58_v30  ;;  %v69_v36 = vsel %vm56_vm1, %v67_v23, %v68_v24 }
   0x9   :  { %739 = vmatmul.msk.f32.vlgmr.msra.gmra.mxu0 %vm87_vm2, %v59_v35 }
   0xa   :  { %8 = vsyncpa [#allocation3], 0  ;;  %v76_v37 = vsel %vm56_vm1, %v73_v9, %v75_v29  ;;  %v971_v38 = vld [vmem:[%s1200_s0 + $0x40] sm:$0xff]  ;;  %v60_v39 = vrot.slane %v17_v34, 1  ;;  %v84_v40 = vsel %vm56_vm1, %v82_v32, %v83_v33  ;;  %v983_v42 = vld [vmem:[%s1200_s0 + $0x88] sm:$0xff]  ;;  %v250_v52 = vrot.slane %v15_v21, 2 }
   0xb   :  { %v977_v41 = vld [vmem:[%s1200_s0 + $0x60] sm:$0xff]  ;;  %v70_v43 = vrot.slane %v971_v38, 1  ;;  %v85_v46 = vrot.slane %v983_v42, 1  ;;  %v18_v47 = vld [vmem:[%s1200_s0 + $0x18] sm:$0xff]  ;;  %v251_v53 = vrot.slane %v940_v25, 2  ;;  %vm249_vm3 = vcmask 1045504  }
   0xc   :  { %v77_v44 = vrot.slane %v977_v41, 1  ;;  %v61_v45 = vsel %vm56_vm1, %v58_v30, %v60_v39  ;;  %v62_v50 = vrot.slane %v18_v47, 1  ;;  %v373_v55 = vrot.slane %v15_v21, 3  ;;  %s729_s7 = sshll.u32 %s1203_s3, 4  ;;  %s730_s7 = int_to_ptr.hbm [resolvable:$true] %s729_s7 }
   0xd   :  { %v71_v48 = vsel %vm56_vm1, %v68_v24, %v70_v43  ;;  %v86_v51 = vsel %vm56_vm1, %v83_v33, %v85_v46  ;;  %v374_v56 = vrot.slane %v940_v25, 3  ;;  %vm372_vm4 = vcmask 1044480  }
   0xe   :  { %743 = vmatmul.msk.f32.gmra.mxu1 %vm87_vm2, %v69_v36  ;;  %746 = vmatmul.msk.f32.gmra.mxu2 %vm87_vm2, %v76_v37  ;;  %v79_v49 = vsel %vm56_vm1, %v77_v44, %v78_v12  ;;  %v64_v54 = vsel %vm56_vm1, %v62_v50, %v63_v3  ;;  %v252_v57 = vsel %vm249_vm3, %v250_v52, %v251_v53  ;;  %v495_v58 = vrot.slane %v15_v21, 4 }
   0xf   :  { %749 = vmatmul.msk.f32.gmra.mxu3 %vm87_vm2, %v84_v40  ;;  %v496_v59 = vrot.slane %v940_v25, 4  ;;  %v375_v60 = vsel %vm372_vm4, %v373_v55, %v374_v56  ;;  %v253_v61 = vrot.slane %v17_v34, 2  ;;  %v376_v63 = vrot.slane %v17_v34, 3 }
  0x10   :  { %v498_v3 = vrot.slane %v17_v34, 4  ;;  %v255_v8 = vrot.slane %v18_v47, 2  ;;  %v256_v9 = vrot.slane %v861_v1, 2  ;;  %v378_v12 = vrot.slane %v18_v47, 3 }
  0x11   :  { %740 = vmatmul.msk.f32.gmra.mxu0 %vm87_vm2, %v61_v45  ;;  %v497_v62 = vsel %vm112_vm0, %v495_v58, %v496_v59  ;;  %v254_v0 = vsel %vm249_vm3, %v251_v53, %v253_v61  ;;  %v377_v4 = vsel %vm372_vm4, %v374_v56, %v376_v63  ;;  %v379_v13 = vrot.slane %v861_v1, 3 }
  0x12   :  { %v499_v10 = vsel %vm112_vm0, %v496_v59, %v498_v3  ;;  %v257_v14 = vsel %vm249_vm3, %v255_v8, %v256_v9  ;;  %v500_v15 = vrot.slane %v18_v47, 4  ;;  %v501_v16 = vrot.slane %v861_v1, 4 }
  0x13   :  { %v380_v18 = vsel %vm372_vm4, %v378_v12, %v379_v13  ;;  %v381_v23 = vrot.slane %v866_v2, 3  ;;  %v260_v29 = vrot.slane %v914_v17, 2  ;;  %v261_v30 = vrot.slane %v922_v19, 2 }
  0x14   :  { %v502_v22 = vsel %vm112_vm0, %v500_v15, %v501_v16  ;;  %v383_v32 = vrot.slane %v914_v17, 3  ;;  %v384_v33 = vrot.slane %v922_v19, 3  ;;  %v506_v34 = vrot.slane %v922_v19, 4 }
  0x15   :  { %v382_v26 = vsel %vm372_vm4, %v379_v13, %v381_v23  ;;  %v263_v36 = vrot.slane %v971_v38, 2  ;;  %v386_v39 = vrot.slane %v971_v38, 3  ;;  %v508_v43 = vrot.slane %v971_v38, 4 }
  0x16   :  { %744 = vmatmul.msk.f32.gmra.mxu1 %vm87_vm2, %v71_v48  ;;  %747 = vmatmul.msk.f32.gmra.mxu2 %vm87_vm2, %v79_v49  ;;  %v385_v35 = vsel %vm372_vm4, %v383_v32, %v384_v33  ;;  %v266_v45 = vrot.slane %v880_v6, 2  ;;  %v389_v48 = vrot.slane %v880_v6, 3  ;;  %v511_v49 = vrot.slane %v880_v6, 4 }
  0x17   :  { %750 = vmatmul.msk.f32.gmra.mxu3 %vm87_vm2, %v86_v51  ;;  %v264_v40 = vsel %vm249_vm3, %v261_v30, %v263_v36  ;;  %v387_v44 = vsel %vm372_vm4, %v384_v33, %v386_v39  ;;  %v509_v46 = vsel %vm112_vm0, %v506_v34, %v508_v43  ;;  %v268_v51 = vrot.slane %v927_v20, 2 }
  0x18   :  { %v391_v53 = vrot.slane %v927_v20, 3  ;;  %v513_v55 = vrot.slane %v927_v20, 4  ;;  %v393_v59 = vrot.slane %v977_v41, 3  ;;  %v516_v61 = vrot.slane %v885_v7, 4 }
  0x19   :  { %741 = vmatmul.msk.f32.gmra.mxu0 %vm87_vm2, %v64_v54  ;;  %v269_v54 = vsel %vm249_vm3, %v266_v45, %v268_v51  ;;  %v273_v63 = vrot.slane %v896_v11, 2  ;;  %v396_v3 = vrot.slane %v896_v11, 3  ;;  %v518_v8 = vrot.slane %v896_v11, 4 }
  0x1a   :  { %v392_v56 = vsel %vm372_vm4, %v389_v48, %v391_v53  ;;  %v514_v58 = vsel %vm112_vm0, %v511_v49, %v513_v55  ;;  %v398_v13 = vrot.slane %v945_v27, 3  ;;  %v521_v15 = vrot.slane %v950_v28, 4  ;;  %v1161_v53 = vld [vmem:[%s1202_s2] ss:$0 sm:$0xff]  ;;  %s834_s2 = smov [#allocation2]  }
  0x1b   :  { %v519_v12 = vsel %vm112_vm0, %v516_v61, %v518_v8  ;;  %vm710_vm6 = vcmask 1041409   ;;  %vm712_vm7 = vcmask 1042434   ;;  %vm714_vm8 = vcmask 1043459   ;;  %s727_s4 = sshll.u32 %s834_s2, 4  ;;  %s728_s4 = int_to_ptr.vmem [resolvable:$true] %s727_s4 }
  0x1c   :  { %vm716_vm9 = vcmask 1044484   ;;  %vm718_vm10 = vcmask 1045509  }
  0x1e   :  { %752 = vmatmul.msk.f32.vlgmr.msrb.gmra.mxu1 %vm87_vm2, %v15_v21  ;;  %765 = vmatmul.msk.f32.vlgmr.msrb.gmra.mxu2 %vm87_vm2, %v252_v57  ;;  %v258_v21 = vrot.slane %v866_v2, 2  ;;  %v271_v57 = vrot.slane %v885_v7, 2 }
  0x1f   :  { %778 = vmatmul.msk.f32.vlgmr.msrb.gmra.mxu3 %vm87_vm2, %v375_v60  ;;  %v394_v60 = vrot.slane %v885_v7, 3 }
  0x20   :  { %v259_v24 = vsel %vm249_vm3, %v256_v9, %v258_v21 }
  0x21   :  { %791 = vmatmul.msk.f32.vlgmr.msrb.gmra.mxu0 %vm87_vm2, %v497_v62  ;;  %v395_v62 = vsel %vm372_vm4, %v393_v59, %v394_v60  ;;  %v397_v9 = vsel %vm372_vm4, %v394_v60, %v396_v3 }
  0x26   :  { %753 = vmatmul.msk.f32.gmra.mxu1 %vm87_vm2, %v940_v25  ;;  %766 = vmatmul.msk.f32.gmra.mxu2 %vm87_vm2, %v254_v0  ;;  %v503_v25 = vrot.slane %v866_v2, 4  ;;  %v262_v2 = vsel %vm249_vm3, %v260_v29, %v261_v30 }
  0x27   :  { %779 = vmatmul.msk.f32.gmra.mxu3 %vm87_vm2, %v377_v4  ;;  %v274_v4 = vsel %vm249_vm3, %v271_v57, %v273_v63 }
  0x28   :  { %v504_v31 = vsel %vm112_vm0, %v501_v16, %v503_v25 }
  0x29   :  { %792 = vmatmul.msk.f32.gmra.mxu0 %vm87_vm2, %v499_v10  ;;  %v276_v10 = vrot.slane %v950_v28, 2 }
  0x2e   :  { %754 = vmatmul.msk.f32.gmra.mxu1 %vm87_vm2, %v18_v47  ;;  %767 = vmatmul.msk.f32.gmra.mxu2 %vm87_vm2, %v257_v14  ;;  %v388_v47 = vrot.slane %v875_v5, 3  ;;  %v399_v14 = vrot.slane %v950_v28, 3 }
  0x2f   :  { %780 = vmatmul.msk.f32.gmra.mxu3 %vm87_vm2, %v380_v18  ;;  %v278_v18 = vrot.slane %v983_v42, 2 }
  0x30   :  { %v390_v50 = vsel %vm372_vm4, %v388_v47, %v389_v48  ;;  %v400_v16 = vsel %vm372_vm4, %v398_v13, %v399_v14  ;;  %v645_v47 = vlaneseq }
  0x31   :  { %793 = vmatmul.msk.f32.gmra.mxu0 %vm87_vm2, %v502_v22  ;;  %v401_v22 = vrot.slane %v983_v42, 3  ;;  %v279_v23 = vsel %vm249_vm3, %v276_v10, %v278_v18 }
  0x33   :  { %v402_v25 = vsel %vm372_vm4, %v399_v14, %v401_v22 }
  0x36   :  { %755 = vmatmul.msk.f32.gmra.mxu1 %vm87_vm2, %v861_v1  ;;  %768 = vmatmul.msk.f32.gmra.mxu2 %vm87_vm2, %v259_v24  ;;  %v505_v1 = vrot.slane %v914_v17, 4  ;;  %v523_v24 = vrot.slane %v983_v42, 4 }
  0x37   :  { %781 = vmatmul.msk.f32.gmra.mxu3 %vm87_vm2, %v382_v26 }
  0x38   :  { %v507_v37 = vsel %vm112_vm0, %v505_v1, %v506_v34 }
  0x39   :  { %794 = vmatmul.msk.f32.gmra.mxu0 %vm87_vm2, %v504_v31 }
  0x3e   :  { %756 = vmatmul.msk.f32.gmra.mxu1 %vm87_vm2, %v914_v17  ;;  %769 = vmatmul.msk.f32.gmra.mxu2 %vm87_vm2, %v262_v2  ;;  %v265_v17 = vrot.slane %v875_v5, 2 }
  0x3f   :  { %782 = vmatmul.msk.f32.gmra.mxu3 %vm87_vm2, %v385_v35 }
  0x40   :  { %v267_v38 = vsel %vm249_vm3, %v265_v17, %v266_v45 }
  0x41   :  { %795 = vmatmul.msk.f32.gmra.mxu0 %vm87_vm2, %v507_v37 }
  0x46   :  { %757 = vmatmul.msk.f32.gmra.mxu1 %vm87_vm2, %v922_v19  ;;  %770 = vmatmul.msk.f32.gmra.mxu2 %vm87_vm2, %v264_v40  ;;  %v510_v19 = vrot.slane %v875_v5, 4 }
  0x47   :  { %783 = vmatmul.msk.f32.gmra.mxu3 %vm87_vm2, %v387_v44 }
  0x48   :  { %v512_v52 = vsel %vm112_vm0, %v510_v19, %v511_v49  ;;  %v646_v49 = vshrl.u32 %v645_v47, 7 }
  0x49   :  { %796 = vmatmul.msk.f32.gmra.mxu0 %vm87_vm2, %v509_v46 }
  0x4e   :  { %758 = vmatmul.msk.f32.gmra.mxu1 %vm87_vm2, %v875_v5  ;;  %771 = vmatmul.msk.f32.gmra.mxu2 %vm87_vm2, %v267_v38  ;;  %v270_v5 = vrot.slane %v977_v41, 2 }
  0x4f   :  { %784 = vmatmul.msk.f32.gmra.mxu3 %vm87_vm2, %v390_v50 }
  0x50   :  { %v272_v20 = vsel %vm249_vm3, %v270_v5, %v271_v57 }
  0x51   :  { %797 = vmatmul.msk.f32.gmra.mxu0 %vm87_vm2, %v512_v52 }
  0x56   :  { %759 = vmatmul.msk.f32.gmra.mxu1 %vm87_vm2, %v880_v6  ;;  %772 = vmatmul.msk.f32.gmra.mxu2 %vm87_vm2, %v269_v54  ;;  %v515_v6 = vrot.slane %v977_v41, 4 }
  0x57   :  { %785 = vmatmul.msk.f32.gmra.mxu3 %vm87_vm2, %v392_v56  ;;  %v1163_v56 = vadd.s32 8, %v646_v49 }
  0x58   :  { %v517_v0 = vsel %vm112_vm0, %v515_v6, %v516_v61 }
  0x59   :  { %798 = vmatmul.msk.f32.gmra.mxu0 %vm87_vm2, %v514_v58  ;;  %vm649_vm5 = vcmp.lt.s32.totalorder %v1163_v56, 12 }
  0x5e   :  { %760 = vmatmul.msk.f32.gmra.mxu1 %vm87_vm2, %v977_v41  ;;  %773 = vmatmul.msk.f32.gmra.mxu2 %vm87_vm2, %v272_v20  ;;  %v275_v41 = vrot.slane %v945_v27, 2 }
  0x5f   :  { %786 = vmatmul.msk.f32.gmra.mxu3 %vm87_vm2, %v395_v62 }
  0x60   :  { %v277_v11 = vsel %vm249_vm3, %v275_v41, %v276_v10 }
  0x61   :  { %799 = vmatmul.msk.f32.gmra.mxu0 %vm87_vm2, %v517_v0 }
  0x66   :  { %761 = vmatmul.msk.f32.gmra.mxu1 %vm87_vm2, %v885_v7  ;;  %774 = vmatmul.msk.f32.gmra.mxu2 %vm87_vm2, %v274_v4  ;;  %v520_v7 = vrot.slane %v945_v27, 4 }
  0x67   :  { %787 = vmatmul.msk.f32.gmra.mxu3 %vm87_vm2, %v397_v9 }
  0x68   :  { %v522_v21 = vsel %vm112_vm0, %v520_v7, %v521_v15 }
  0x69   :  { %800 = vmatmul.msk.f32.gmra.mxu0 %vm87_vm2, %v519_v12 }
  0x6e   :  { %762 = vmatmul.msk.f32.gmra.mxu1 %vm87_vm2, %v945_v27  ;;  %775 = vmatmul.msk.f32.gmra.mxu2 %vm87_vm2, %v277_v11  ;;  %v524_v27 = vsel %vm112_vm0, %v521_v15, %v523_v24 }
  0x6f   :  { %788 = vmatmul.msk.f32.gmra.mxu3 %vm87_vm2, %v400_v16 }
  0x71   :  { %801 = vmatmul.msk.f32.gmra.mxu0 %vm87_vm2, %v522_v21 }
  0x76   :  { %763 = vmatmul.msk.f32.gmra.mxu1 %vm87_vm2, %v950_v28  ;;  %776 = vmatmul.msk.f32.gmra.mxu2 %vm87_vm2, %v279_v23 }
  0x77   :  { %789 = vmatmul.msk.f32.gmra.mxu3 %vm87_vm2, %v402_v25 }
  0x79   :  { %802 = vmatmul.msk.f32.gmra.mxu0 %vm87_vm2, %v524_v27 }
  0x83   :  { %v142_v26 = vpop.f32.mrf.mxu1 }
  0x86   :  { %v133_v29 = vpop.f32.mrf.mxu0 }
  0x89   :  { %v1144_v30 = vpop.f32.mrf.mxu2 }
  0x8a   :  { %v1146_v32 = vpop.f32.mrf.mxu3 }
  0x8b   :  { %v145_v31 = vpop.f32.mrf.mxu1 }
  0x8e   :  { %v136_v42 = vpop.f32.mrf.mxu0 }
  0x91   :  { %v1148_v33 = vpop.f32.mrf.mxu2 }
  0x92   :  { %v1152_v28 = vpop.f32.mrf.mxu3 }
  0x93   :  { %v1150_v2 = vpop.f32.mrf.mxu1 }
  0x96   :  { %v139_v1 = vpop.f32.mrf.mxu0 }
  0x99   :  { %v1154_v34 = vpop.f32.mrf.mxu2 }
  0x9a   :  { %v1156_v35 = vpop.f32.mrf.mxu3 }
  0x9b   :  { %v213_v36 = vpop.f32.mrf.mxu1 }
  0x9c   :  { %v214_v37 = vadd.f32 %v213_v36, %v133_v29 }
  0x9e   :  { %v569_v39 = vpop.f32.mrf.mxu0 }
  0xa1   :  { %v324_v40 = vpop.f32.mrf.mxu2 }
  0xa2   :  { %v360_v43 = vadd.f32 %v324_v40, %v214_v37  ;;  %v447_v17 = vpop.f32.mrf.mxu3 }
  0xa3   :  { %v216_v44 = vpop.f32.mrf.mxu1 }
  0xa4   :  { %v217_v45 = vadd.f32 %v216_v44, %v136_v42  ;;  %v483_v46 = vadd.f32 %v447_v17, %v360_v43 }
  0xa6   :  { %v605_v48 = vadd.f32 %v569_v39, %v483_v46  ;;  %v572_v38 = vpop.f32.mrf.mxu0 }
  0xa8   :  { %v621_v57 = vadd.f32 %v1161_v53, %v605_v48 }
  0xa9   :  { %v327_v19 = vpop.f32.mrf.mxu2 }
  0xaa   :  { %v361_v50 = vadd.f32 %v327_v19, %v217_v45  ;;  %v450_v52 = vpop.f32.mrf.mxu3  ;;  %v633_v63 = vmax.f32 %v621_v57, 0.0 }
  0xab   :  { %v219_v51 = vpop.f32.mrf.mxu1 }
  0xac   :  { %v220_v54 = vadd.f32 %v219_v51, %v139_v1  ;;  %v484_v55 = vadd.f32 %v450_v52, %v361_v50 }
  0xae   :  { %v606_v5 = vadd.f32 %v572_v38, %v484_v55  ;;  %v575_v58 = vpop.f32.mrf.mxu0 }
  0xb0   :  { %v622_v59 = vadd.f32 %v1161_v53, %v606_v5 }
  0xb1   :  { %v330_v60 = vpop.f32.mrf.mxu2 }
  0xb2   :  { %v634_v20 = vmax.f32 %v622_v59, 0.0  ;;  %v362_v6 = vadd.f32 %v330_v60, %v220_v54  ;;  %v453_v62 = vpop.f32.mrf.mxu3 }
  0xb3   :  { %v222_v61 = vpop.f32.mrf.mxu1 }
  0xb4   :  { %v651_v0 = vsel %vm649_vm5, %v634_v20, 0.0  ;;  %v485_v3 = vadd.f32 %v453_v62, %v362_v6  ;;  %v223_v41 = vadd.f32 %v222_v61, %v142_v26 }
  0xb5   :  { %v662_v4 = vmax.f32 %v633_v63, %v651_v0 }
  0xb6   :  { %v607_v8 = vadd.f32 %v575_v58, %v485_v3  ;;  %v578_v9 = vpop.f32.mrf.mxu0 }
  0xb7   :  { %v663_v7 = vrot.slane %v662_v4, 4 }
  0xb8   :  { %v623_v16 = vadd.f32 %v1161_v53, %v607_v8 }
  0xb9   :  { %v333_v10 = vpop.f32.mrf.mxu2  ;;  %v664_v22 = vmax.f32 %v662_v4, %v663_v7 }
  0xba   :  { %v363_v12 = vadd.f32 %v333_v10, %v223_v41  ;;  %v456_v14 = vpop.f32.mrf.mxu3  ;;  %v635_v42 = vmax.f32 %v623_v16, 0.0 }
  0xbb   :  { %v225_v13 = vpop.f32.mrf.mxu1  ;;  %v665_v36 = vrot.slane %v664_v22, 2 }
  0xbc   :  { %v486_v11 = vadd.f32 %v456_v14, %v363_v12  ;;  %v226_v23 = vadd.f32 %v225_v13, %v145_v31 }
  0xbd   :  { %v666_v17 = vmax.f32 %v664_v22, %v665_v36 }
  0xbe   :  { %v608_v15 = vadd.f32 %v578_v9, %v486_v11  ;;  %v581_v18 = vpop.f32.mrf.mxu0 }
  0xbf   :  { %v667_v50 = vrot.slane %v666_v17, 1 }
  0xc0   :  { %v624_v21 = vadd.f32 %v1161_v53, %v608_v15 }
  0xc1   :  { %v336_v24 = vpop.f32.mrf.mxu2 }
  0xc2   :  { %v636_v25 = vmax.f32 %v624_v21, 0.0  ;;  %v459_v29 = vpop.f32.mrf.mxu3  ;;  %v364_v26 = vadd.f32 %v336_v24, %v226_v23 }
  0xc3   :  { %v228_v27 = vpop.f32.mrf.mxu1 }
  0xc4   :  { %v653_v1 = vsel %vm649_vm5, %v636_v25, 0.0  ;;  %v487_v40 = vadd.f32 %v459_v29, %v364_v26  ;;  %v229_v44 = vadd.f32 %v228_v27, %v1150_v2  ;;  %v668_v2 = vmax.f32 %v666_v17, %v667_v50 }
  0xc5   :  { %v669_v37 = vmax.f32 %v635_v42, %v653_v1 }
  0xc6   :  { %v584_v43 = vpop.f32.mrf.mxu0  ;;  %v609_v19 = vadd.f32 %v581_v18, %v487_v40 }
  0xc7   :  { %v670_v39 = vrot.slane %v669_v37, 4 }
  0xc8   :  { %v625_v55 = vadd.f32 %v1161_v53, %v609_v19 }
  0xc9   :  { %v671_v45 = vmax.f32 %v669_v37, %v670_v39  ;;  %v339_v46 = vpop.f32.mrf.mxu2 }
  0xca   :  { %v365_v31 = vadd.f32 %v339_v46, %v229_v44  ;;  %v462_v48 = vpop.f32.mrf.mxu3  ;;  %v637_v62 = vmax.f32 %v625_v55, 0.0 }
  0xcb   :  { %v231_v47 = vpop.f32.mrf.mxu1  ;;  %v672_v38 = vrot.slane %v671_v45, 2 }
  0xcc   :  { %v488_v49 = vadd.f32 %v462_v48, %v365_v31  ;;  %v232_v59 = vadd.f32 %v231_v47, %v1144_v30 }
  0xcd   :  { %v673_v51 = vmax.f32 %v671_v45, %v672_v38 }
  0xce   :  { %v610_v52 = vadd.f32 %v584_v43, %v488_v49  ;;  %v587_v5 = vpop.f32.mrf.mxu0 }
  0xcf   :  { %v674_v54 = vrot.slane %v673_v51, 1 }
  0xd0   :  { %v626_v57 = vadd.f32 %v1161_v53, %v610_v52 }
  0xd1   :  { %v675_v58 = vmax.f32 %v673_v51, %v674_v54  ;;  %v342_v60 = vpop.f32.mrf.mxu2 }
  0xd2   :  { %v638_v20 = vmax.f32 %v626_v57, 0.0  ;;  %v465_v61 = vpop.f32.mrf.mxu3  ;;  %v366_v63 = vadd.f32 %v342_v60, %v232_v59 }
  0xd3   :  { %v234_v6 = vpop.f32.mrf.mxu1  ;;  %v711_v0 = vsel %vm710_vm6, %v675_v58, %v668_v2 }
  0xd4   :  { %v655_v3 = vsel %vm649_vm5, %v638_v20, 0.0  ;;  %v489_v9 = vadd.f32 %v465_v61, %v366_v63  ;;  %v235_v10 = vadd.f32 %v234_v6, %v1148_v33 }
  0xd5   :  { %v676_v4 = vmax.f32 %v637_v62, %v655_v3 }
  0xd6   :  { %v590_v41 = vpop.f32.mrf.mxu0  ;;  %v611_v15 = vadd.f32 %v587_v5, %v489_v9 }
  0xd7   :  { %v677_v8 = vrot.slane %v676_v4, 4 }
  0xd8   :  { %v627_v23 = vadd.f32 %v1161_v53, %v611_v15 }
  0xd9   :  { %v678_v12 = vmax.f32 %v676_v4, %v677_v8  ;;  %v345_v13 = vpop.f32.mrf.mxu2 }
  0xda   :  { %v367_v14 = vadd.f32 %v345_v13, %v235_v10  ;;  %v468_v11 = vpop.f32.mrf.mxu3  ;;  %v639_v36 = vmax.f32 %v627_v23, 0.0 }
  0xdb   :  { %v237_v30 = vpop.f32.mrf.mxu1  ;;  %v679_v7 = vrot.slane %v678_v12, 2 }
  0xdc   :  { %v490_v16 = vadd.f32 %v468_v11, %v367_v14  ;;  %v238_v33 = vadd.f32 %v237_v30, %v1154_v34 }
  0xdd   :  { %v680_v18 = vmax.f32 %v678_v12, %v679_v7 }
  0xde   :  { %v612_v21 = vadd.f32 %v590_v41, %v490_v16  ;;  %v593_v24 = vpop.f32.mrf.mxu0 }
  0xdf   :  { %v681_v22 = vrot.slane %v680_v18, 1 }
  0xe0   :  { %v628_v25 = vadd.f32 %v1161_v53, %v612_v21 }
  0xe1   :  { %v682_v27 = vmax.f32 %v680_v18, %v681_v22  ;;  %v348_v29 = vpop.f32.mrf.mxu2 }
  0xe2   :  { %v640_v42 = vmax.f32 %v628_v25, 0.0  ;;  %v471_v1 = vpop.f32.mrf.mxu3  ;;  %v368_v37 = vadd.f32 %v348_v29, %v238_v33 }
  0xe3   :  { %v240_v26 = vpop.f32.mrf.mxu1  ;;  %v713_v39 = vsel %vm712_vm7, %v682_v27, %v711_v0 }
  0xe4   :  { %v657_v40 = vsel %vm649_vm5, %v640_v42, 0.0  ;;  %v491_v17 = vadd.f32 %v471_v1, %v368_v37  ;;  %v241_v46 = vadd.f32 %v240_v26, %v1146_v32 }
  0xe5   :  { %v683_v43 = vmax.f32 %v639_v36, %v657_v40 }
  0xe6   :  { %v596_v45 = vpop.f32.mrf.mxu0  ;;  %v613_v19 = vadd.f32 %v593_v24, %v491_v17 }
  0xe7   :  { %v684_v44 = vrot.slane %v683_v43, 4 }
  0xe8   :  { %v629_v55 = vadd.f32 %v1161_v53, %v613_v19 }
  0xe9   :  { %v685_v31 = vmax.f32 %v683_v43, %v684_v44  ;;  %v351_v47 = vpop.f32.mrf.mxu2 }
  0xea   :  { %v369_v48 = vadd.f32 %v351_v47, %v241_v46  ;;  %v474_v34 = vpop.f32.mrf.mxu3  ;;  %v641_v20 = vmax.f32 %v629_v55, 0.0 }
  0xeb   :  { %v686_v38 = vrot.slane %v685_v31, 2  ;;  %v243_v49 = vpop.f32.mrf.mxu1 }
  0xec   :  { %v492_v50 = vadd.f32 %v474_v34, %v369_v48  ;;  %v244_v2 = vadd.f32 %v243_v49, %v1152_v28 }
  0xed   :  { %v687_v51 = vmax.f32 %v685_v31, %v686_v38 }
  0xee   :  { %v614_v52 = vadd.f32 %v596_v45, %v492_v50  ;;  %v599_v58 = vpop.f32.mrf.mxu0 }
  0xef   :  { %v688_v54 = vrot.slane %v687_v51, 1 }
  0xf0   :  { %v630_v5 = vadd.f32 %v1161_v53, %v614_v52 }
  0xf1   :  { %v689_v57 = vmax.f32 %v687_v51, %v688_v54  ;;  %v354_v32 = vpop.f32.mrf.mxu2 }
  0xf2   :  { %v642_v59 = vmax.f32 %v630_v5, 0.0  ;;  %v477_v60 = vpop.f32.mrf.mxu3  ;;  %v370_v6 = vadd.f32 %v354_v32, %v244_v2 }
  0xf3   :  { %v715_v61 = vsel %vm714_vm8, %v689_v57, %v713_v39  ;;  %v246_v0 = vpop.f32.mrf.mxu1 }
  0xf4   :  { %v659_v62 = vsel %vm649_vm5, %v642_v59, 0.0  ;;  %v493_v4 = vadd.f32 %v477_v60, %v370_v6  ;;  %v247_v8 = vadd.f32 %v246_v0, %v1156_v35 }
  0xf5   :  { %v690_v63 = vmax.f32 %v641_v20, %v659_v62 }
  0xf6   :  { %v615_v13 = vadd.f32 %v599_v58, %v493_v4  ;;  %v602_v14 = vpop.f32.mrf.mxu0 }
  0xf7   :  { %v691_v3 = vrot.slane %v690_v63, 4 }
  0xf8   :  { %v631_v16 = vadd.f32 %v1161_v53, %v615_v13 }
  0xf9   :  { %v692_v9 = vmax.f32 %v690_v63, %v691_v3  ;;  %v357_v41 = vpop.f32.mrf.mxu2 }
  0xfa   :  { %v371_v10 = vadd.f32 %v357_v41, %v247_v8  ;;  %v480_v28 = vpop.f32.mrf.mxu3  ;;  %v643_v23 = vmax.f32 %v631_v16, 0.0 }
  0xfb   :  { %v693_v12 = vrot.slane %v692_v9, 2 }
  0xfc   :  { %v494_v30 = vadd.f32 %v480_v28, %v371_v10 }
  0xfd   :  { %v694_v11 = vmax.f32 %v692_v9, %v693_v12 }
  0xfe   :  { %v616_v7 = vadd.f32 %v602_v14, %v494_v30 }
  0xff   :  { %v695_v15 = vrot.slane %v694_v11, 1 }
 0x100   :  { %v632_v18 = vadd.f32 %v1161_v53, %v616_v7 }
 0x101   :  { %v696_v21 = vmax.f32 %v694_v11, %v695_v15 }
 0x102   :  { %v644_v22 = vmax.f32 %v632_v18, 0.0 }
 0x103   :  { %v717_v35 = vsel %vm716_vm9, %v696_v21, %v715_v61 }
 0x104   :  { %v661_v24 = vsel %vm649_vm5, %v644_v22, 0.0 }
 0x105   :  { %v697_v25 = vmax.f32 %v643_v23, %v661_v24 }
 0x107   :  { %v698_v27 = vrot.slane %v697_v25, 4 }
 0x109   :  { %v699_v33 = vmax.f32 %v697_v25, %v698_v27 }
 0x10b   :  { %v700_v29 = vrot.slane %v699_v33, 2 }
 0x10d   :  { %v701_v42 = vmax.f32 %v699_v33, %v700_v29 }
 0x10f   :  { %v702_v26 = vrot.slane %v701_v42, 1 }
 0x111   :  { %v703_v53 = vmax.f32 %v701_v42, %v702_v26 }
 0x113   :  { %v719_v1 = vsel %vm718_vm10, %v703_v53, %v717_v35 }
 0x114   :  { %721 = vst [vmem:[#allocation2] sm:$0x3f] %v719_v1 }
 0x115   :  { %732 = dma.vmem_to_hbm [thread:$0]  %s728_s4, 128, %s730_s7, [#allocation3]  }
 0x116   :  { %832 = dma.done.wait [#allocation3], 128  }
 0x117   :  { %833 = vsyncadd [#allocation3], 4294967168 }
 0x118   :  { %737 = vsyncpa [#allocation3], 1 }

</bundles_post_ra>
